<compile_context>
chip_gen: v5e
topology: v5e:2x2
jax: 0.10.0
libtpu: 0.0.40
codegen_flags: <defaults>
</compile_context>

<pallas_src>
import functools

import jax
import jax.numpy as jnp
from jax import lax
from jax.experimental import pallas as pl
from jax.experimental.pallas import tpu as pltpu

LANES = 128
SUBLANES = 8
DEFAULT_BLOCK_ROWS = 4096        # 2 MiB per f32 input per grid step
SPLIT_MIN_ROWS = 1024            # split mid-sized inputs into 2 even blocks
STRIP_CANDIDATES = (512, 256, 128, 64, 32, 16, 8)


def _si_partial_kernel(pred_ref, target_ref, out_ref, *,
                       rows_total, block_rows, strip_rows, num_strips,
                       has_ragged):
    """Per-block partial sums: sum(diff), sum(diff^2), valid-pixel count."""
    sub_per_strip = strip_rows // SUBLANES

    def accumulate(valid_fn):
        def body(s, carry):
            sd, sdd, cn = carry
            r0 = pl.multiple_of(s * strip_rows, strip_rows)
            p = jnp.maximum(
                pred_ref[pl.ds(r0, strip_rows), :].astype(jnp.float32), 1e-6)
            t = jnp.maximum(
                target_ref[pl.ds(r0, strip_rows), :].astype(jnp.float32), 1e-6)
            valid = valid_fn(t, r0)
            # Exactly the reference arithmetic: log(pred) - log(target).
            diff = jnp.where(valid, jnp.log(p) - jnp.log(t), 0.0)
            d3 = diff.reshape(sub_per_strip, SUBLANES, LANES)
            v3 = valid.astype(jnp.float32).reshape(sub_per_strip, SUBLANES,
                                                   LANES)
            return (sd + jnp.sum(d3, axis=0),
                    sdd + jnp.sum(d3 * d3, axis=0),
                    cn + jnp.sum(v3, axis=0))

        zero = jnp.zeros((SUBLANES, LANES), jnp.float32)
        return lax.fori_loop(0, num_strips, body, (zero, zero, zero))

    def write(sd, sdd, cn):
        out_ref[0, 0, :, :] = sd
        out_ref[0, 1, :, :] = sdd
        out_ref[0, 2, :, :] = cn

    # Hot path: after the clamp, one compare is the entire validity test
    # (NaN and +inf compare false; -inf was clamped to 1e-6 -> valid).
    write(*accumulate(lambda t, r0: t < jnp.inf))

    if has_ragged:
        # Cold path: only the last grid block can read past the end of the
        # array, and only it pays for the row-index mask.  It recomputes the
        # block's partials and overwrites the hot-path result.
        i = pl.program_id(0)

        @pl.when(i == pl.num_programs(0) - 1)
        def _():
            def ragged_valid(t, r0):
                row = lax.broadcasted_iota(jnp.int32, (strip_rows, LANES), 0)
                global_row = i * block_rows + r0 + row
                return jnp.logical_and(global_row < rows_total, t < jnp.inf)

            write(*accumulate(ragged_valid))


def scale_invariant_loss(pred, target, alpha=0.5, beta=0.5,
                         block_rows=DEFAULT_BLOCK_ROWS):
    """Pallas implementation of ScaleInvariantLoss.forward.

    The reference forward recomputes `mask` internally, so no mask argument is
    taken here; `beta` is unused, matching the reference module.
    """
    del beta  # unused by the reference forward pass

    pred_f = jnp.ravel(pred)        # keep input dtype; the kernel upcasts
    target_f = jnp.ravel(target)
    n = int(pred_f.shape[0])

    # Pad only up to an (8*128)-element multiple so the flat vector reshapes
    # into full (8,128) tiles.  The target pad is NaN, so padded elements fail
    # the same `t < inf` validity test as real NaNs (no index mask needed).
    # For tile-aligned depth maps this branch is skipped entirely.
    n_pad = (-n) % (SUBLANES * LANES)
    if n_pad:
        pred_f = jnp.pad(pred_f, (0, n_pad), constant_values=1.0)
        target_f = jnp.pad(target_f, (0, n_pad), constant_values=jnp.nan)

    rows = (n + n_pad) // LANES                 # multiple of SUBLANES
    block_rows = int(block_rows)
    if rows <= block_rows:
        if rows >= SPLIT_MIN_ROWS and rows % (2 * SUBLANES) == 0:
            block_rows = rows // 2              # 2 even blocks for megacore
        else:
            block_rows = rows                   # single full-extent block
    num_blocks = pl.cdiv(rows, block_rows)
    has_ragged = (rows % block_rows) != 0

    strip_rows = SUBLANES
    for cand in STRIP_CANDIDATES:
        if block_rows % cand == 0:
            strip_rows = cand
            break
    num_strips = block_rows // strip_rows

    pred2d = pred_f.reshape(rows, LANES)
    target2d = target_f.reshape(rows, LANES)

    in_bytes = rows * LANES * (pred2d.dtype.itemsize + target2d.dtype.itemsize)
    out_bytes = num_blocks * 3 * SUBLANES * LANES * 4
    cost = pl.CostEstimate(flops=10 * n, transcendentals=2 * n,
                           bytes_accessed=in_bytes + out_bytes)

    parts = pl.pallas_call(
        functools.partial(_si_partial_kernel,
                          rows_total=int(rows),
                          block_rows=int(block_rows),
                          strip_rows=int(strip_rows),
                          num_strips=int(num_strips),
                          has_ragged=bool(has_ragged)),
        out_shape=jax.ShapeDtypeStruct((num_blocks, 3, SUBLANES, LANES),
                                       jnp.float32),
        grid_spec=pltpu.PrefetchScalarGridSpec(
            num_scalar_prefetch=0,
            grid=(num_blocks,),
            in_specs=[
                pl.BlockSpec((block_rows, LANES), lambda i: (i, 0)),
                pl.BlockSpec((block_rows, LANES), lambda i: (i, 0)),
            ],
            out_specs=pl.BlockSpec((1, 3, SUBLANES, LANES),
                                   lambda i: (i, 0, 0, 0)),
        ),
        compiler_params=pltpu.CompilerParams(
            dimension_semantics=("parallel",)),
        cost_estimate=cost,
    )(pred2d, target2d)

    sum_d = jnp.sum(parts[:, 0])
    sum_dd = jnp.sum(parts[:, 1])
    n_valid = jnp.sum(parts[:, 2]) + 1e-6

    mse = sum_dd / n_valid
    mean_diff = sum_d / n_valid
    return mse - jnp.float32(alpha) * (mean_diff * mean_diff)


def _reference_loss(pred, target, alpha=0.5):
    """Pure-JAX reference mirroring the PyTorch forward exactly."""
    pred = jnp.maximum(pred.astype(jnp.float32), 1e-6)
    target = jnp.maximum(target.astype(jnp.float32), 1e-6)
    mask = jnp.logical_and(~jnp.isnan(target), ~jnp.isinf(target))
    n_valid = jnp.sum(mask) + 1e-6
    diff = jnp.log(pred) - jnp.log(target)
    diff = jnp.where(mask, diff, jnp.zeros_like(diff))
    mse = jnp.sum(diff * diff) / n_valid
    mean_diff = jnp.sum(diff) / n_valid
    return mse - alpha * (mean_diff * mean_diff)


if __name__ == "__main__":
    key = jax.random.PRNGKey(0)
    k1, k2, k3, k4 = jax.random.split(key, 4)

    # --- small NCHW depth map: batch=2, channels=1, spatial=16x16 -------------
    shape = (2, 1, 16, 16)
    pred = jnp.exp(jax.random.normal(k1, shape, dtype=jnp.float32))
    target = jnp.exp(jax.random.normal(k2, shape, dtype=jnp.float32))
    target = target.at[0, 0, 0, 0].set(jnp.nan)     # invalid
    target = target.at[1, 0, 3, 7].set(jnp.inf)     # invalid
    target = target.at[0, 0, 5, 5].set(-2.0)        # clamps to 1e-6 -> valid

    loss = jax.block_until_ready(scale_invariant_loss(pred, target, 0.5, 0.5))
    ref = _reference_loss(pred, target, 0.5)
    assert jnp.allclose(loss, ref, rtol=1e-5, atol=1e-6), (loss, ref)

    # --- ragged (numel % 1024 != 0) lane-pad path ------------------------------
    shape2 = (1, 1, 7, 9)
    p2 = jnp.exp(jax.random.normal(k3, shape2, dtype=jnp.float32))
    t2 = jnp.exp(jax.random.normal(k4, shape2, dtype=jnp.float32))
    t2 = t2.at[0, 0, 2, 3].set(jnp.nan)
    loss2 = jax.block_until_ready(scale_invariant_loss(p2, t2, 0.5, 0.5))
    ref2 = _reference_loss(p2, t2, 0.5)
    assert jnp.allclose(loss2, ref2, rtol=1e-5, atol=1e-6), (loss2, ref2)

    # --- mid-sized map: 2 even blocks (megacore split), no ragged block -------
    shape3 = (2, 1, 512, 384)        # 393216 elems -> 3072 rows -> 2 x 1536
    p3 = jnp.exp(jax.random.normal(k1, shape3, dtype=jnp.float32))
    t3 = jnp.exp(jax.random.normal(k2, shape3, dtype=jnp.float32))
    t3 = t3.at[0, 0, 10, 10].set(jnp.inf)
    loss3 = jax.block_until_ready(scale_invariant_loss(p3, t3, 0.5, 0.5))
    ref3 = _reference_loss(p3, t3, 0.5)
    # Slightly looser tolerance: different (but both f32) summation orders.
    assert jnp.allclose(loss3, ref3, rtol=1e-4, atol=1e-6), (loss3, ref3)

    # --- large map: multi-block grid with a ragged last block (cold path) -----
    shape4 = (1, 1, 640, 1000)       # 640000 elems -> 5000 rows -> 4096 + 904
    p4 = jnp.exp(jax.random.normal(k3, shape4, dtype=jnp.float32))
    t4 = jnp.exp(jax.random.normal(k4, shape4, dtype=jnp.float32))
    t4 = t4.at[0, 0, 100, 100].set(jnp.nan)
    t4 = t4.at[0, 0, 500, 999].set(jnp.inf)
    t4 = t4.at[0, 0, 639, 0].set(-3.0)
    loss4 = jax.block_until_ready(scale_invariant_loss(p4, t4, 0.5, 0.5))
    ref4 = _reference_loss(p4, t4, 0.5)
    assert jnp.allclose(loss4, ref4, rtol=1e-4, atol=1e-6), (loss4, ref4)

    print("KERNEL_OK")
</pallas_src>

<mosaic_0001>
module attributes {stable_mosaic.version = 11 : i64} {
  func.func @_si_partial_kernel(%arg0: i32, %arg1: memref<8x128xf32, #tpu.memory_space<vmem>>, %arg2: memref<8x128xf32, #tpu.memory_space<vmem>>, %arg3: memref<1x3x8x128xf32, #tpu.memory_space<vmem>>) attributes {dimension_semantics = [#tpu.dimension_semantics<parallel>], iteration_bounds = array<i64: 1>, scalar_prefetch = 0 : i64, scratch_operands = 0 : i64, tpu.core_type = #tpu.core_type<tc>, window_params = [{transform_indices = @transform_0, window_bounds = array<i64: 8, 128>}, {transform_indices = @transform_1, window_bounds = array<i64: 8, 128>}, {transform_indices = @transform_2, window_bounds = array<i64: 1, 3, 8, 128>}]} {
    %cst = arith.constant 0.000000e+00 : f32
    %0 = vector.broadcast %cst : f32 to vector<8x128xf32>
    %c0_i32 = arith.constant 0 : i32
    %c8_i32 = arith.constant 8 : i32
    %1 = arith.muli %c0_i32, %c8_i32 : i32
    %2 = tpu.assume_multiple %1, 8 : i32
    %3 = arith.index_cast %2 : i32 to index
    %c0 = arith.constant 0 : index
    %4 = vector.load %arg1[%3, %c0] : memref<8x128xf32, #tpu.memory_space<vmem>>, vector<8x128xf32>
    %cst_0 = arith.constant 9.99999997E-7 : f32
    %5 = vector.broadcast %cst_0 : f32 to vector<8x128xf32>
    %6 = arith.maximumf %4, %5 : vector<8x128xf32>
    %7 = arith.index_cast %2 : i32 to index
    %c0_1 = arith.constant 0 : index
    %8 = vector.load %arg2[%7, %c0_1] : memref<8x128xf32, #tpu.memory_space<vmem>>, vector<8x128xf32>
    %cst_2 = arith.constant 9.99999997E-7 : f32
    %9 = vector.broadcast %cst_2 : f32 to vector<8x128xf32>
    %10 = arith.maximumf %8, %9 : vector<8x128xf32>
    %cst_3 = arith.constant 0x7F800000 : f32
    %11 = vector.broadcast %cst_3 : f32 to vector<8x128xf32>
    %12 = arith.cmpf olt, %10, %11 : vector<8x128xf32>
    %13 = math.log %6 : vector<8x128xf32>
    %14 = math.log %10 : vector<8x128xf32>
    %15 = arith.subf %13, %14 : vector<8x128xf32>
    %cst_4 = arith.constant 0.000000e+00 : f32
    %16 = vector.broadcast %cst_4 : f32 to vector<8x128xf32>
    %17 = arith.select %12, %15, %16 : vector<8x128xi1>, vector<8x128xf32>
    %18 = vector.shape_cast %17 : vector<8x128xf32> to vector<1x8x128xf32>
    %19 = arith.extui %12 : vector<8x128xi1> to vector<8x128xi32>
    %20 = arith.sitofp %19 : vector<8x128xi32> to vector<8x128xf32>
    %21 = vector.shape_cast %20 : vector<8x128xf32> to vector<1x8x128xf32>
    %cst_5 = arith.constant dense<0.000000e+00> : vector<8x128xf32>
    %22 = vector.multi_reduction <add>, %18, %cst_5 [0] : vector<1x8x128xf32> to vector<8x128xf32>
    %23 = arith.addf %0, %22 : vector<8x128xf32>
    %24 = arith.mulf %18, %18 : vector<1x8x128xf32>
    %cst_6 = arith.constant dense<0.000000e+00> : vector<8x128xf32>
    %25 = vector.multi_reduction <add>, %24, %cst_6 [0] : vector<1x8x128xf32> to vector<8x128xf32>
    %26 = arith.addf %0, %25 : vector<8x128xf32>
    %cst_7 = arith.constant dense<0.000000e+00> : vector<8x128xf32>
    %27 = vector.multi_reduction <add>, %21, %cst_7 [0] : vector<1x8x128xf32> to vector<8x128xf32>
    %28 = arith.addf %0, %27 : vector<8x128xf32>
    %c1_i32 = arith.constant 1 : i32
    %c0_8 = arith.constant 0 : index
    %c0_9 = arith.constant 0 : index
    %c0_10 = arith.constant 0 : index
    %c0_11 = arith.constant 0 : index
    %29 = vector.load %arg3[%c0_8, %c0_9, %c0_10, %c0_11] : memref<1x3x8x128xf32, #tpu.memory_space<vmem>>, vector<1x1x8x128xf32>
    %30 = vector.shape_cast %29 : vector<1x1x8x128xf32> to vector<8x128xf32>
    %31 = vector.shape_cast %23 : vector<8x128xf32> to vector<1x1x8x128xf32>
    tpu.vector_store %arg3[%c0_8, %c0_9, %c0_10, %c0_11], %31 {strides = array<i32>} : memref<1x3x8x128xf32, #tpu.memory_space<vmem>>, vector<1x1x8x128xf32>,
    %c0_12 = arith.constant 0 : index
    %c1 = arith.constant 1 : index
    %c0_13 = arith.constant 0 : index
    %c0_14 = arith.constant 0 : index
    %32 = vector.load %arg3[%c0_12, %c1, %c0_13, %c0_14] : memref<1x3x8x128xf32, #tpu.memory_space<vmem>>, vector<1x1x8x128xf32>
    %33 = vector.shape_cast %32 : vector<1x1x8x128xf32> to vector<8x128xf32>
    %34 = vector.shape_cast %26 : vector<8x128xf32> to vector<1x1x8x128xf32>
    tpu.vector_store %arg3[%c0_12, %c1, %c0_13, %c0_14], %34 {strides = array<i32>} : memref<1x3x8x128xf32, #tpu.memory_space<vmem>>, vector<1x1x8x128xf32>,
    %c0_15 = arith.constant 0 : index
    %c2 = arith.constant 2 : index
    %c0_16 = arith.constant 0 : index
    %c0_17 = arith.constant 0 : index
    %35 = vector.load %arg3[%c0_15, %c2, %c0_16, %c0_17] : memref<1x3x8x128xf32, #tpu.memory_space<vmem>>, vector<1x1x8x128xf32>
    %36 = vector.shape_cast %35 : vector<1x1x8x128xf32> to vector<8x128xf32>
    %37 = vector.shape_cast %28 : vector<8x128xf32> to vector<1x1x8x128xf32>
    tpu.vector_store %arg3[%c0_15, %c2, %c0_16, %c0_17], %37 {strides = array<i32>} : memref<1x3x8x128xf32, #tpu.memory_space<vmem>>, vector<1x1x8x128xf32>,
    return
  }
  func.func @transform_0(%arg0: i32) -> (i32, i32) {
    %c0_i32 = arith.constant 0 : i32
    %c0_i32_0 = arith.constant 0 : i32
    return %arg0, %c0_i32 : i32, i32
  }
  func.func @transform_1(%arg0: i32) -> (i32, i32) {
    %c0_i32 = arith.constant 0 : i32
    %c0_i32_0 = arith.constant 0 : i32
    return %arg0, %c0_i32 : i32, i32
  }
  func.func @transform_2(%arg0: i32) -> (i32, i32, i32, i32) {
    %c0_i32 = arith.constant 0 : i32
    %c0_i32_0 = arith.constant 0 : i32
    %c0_i32_1 = arith.constant 0 : i32
    %c0_i32_2 = arith.constant 0 : i32
    return %arg0, %c0_i32, %c0_i32_0, %c0_i32_1 : i32, i32, i32, i32
  }
}

</mosaic_0001>

<bundles_post_ra>
// kernel: tpu_custom_call.1
= control target key start
LH: loop header
LB: loop body
LE: loop exit
PB: predicated region body
PF: predicated region fallthrough
CT: control target
= control target key end

     0   :  { %7 = vsyncpa [#allocation3], 0  ;;  %s204_s0 = inlined_call_operand.hbm [shape: f32[8,128], index: 0, kind: input, shape index: {}]   ;;  %s205_s1 = inlined_call_operand.hbm [shape: f32[8,128], index: 1, kind: input, shape index: {}]   ;;  %s206_s2 = inlined_call_operand.hbm [shape: f32[1,3,8,128], index: 2, kind: output, shape index: {}]  }
   0x1   :  { %8 = vsyncpa [#allocation6], 0 }
   0x2   :  { %9 = vsyncpa [#allocation4], 0  ;;  %s15_s11 = sshll.u32 %s204_s0, 4  ;;  %s174_s12 = smov [#allocation2]   ;;  %s16_s11 = int_to_ptr.hbm [resolvable:$true] %s15_s11 }
   0x3   :  { %s17_s13 = sshll.u32 %s174_s12, 4  ;;  %s26_s16 = sshll.u32 %s205_s1, 4  ;;  %s18_s13 = int_to_ptr.vmem [resolvable:$true] %s17_s13  ;;  %s27_s16 = int_to_ptr.hbm [resolvable:$true] %s26_s16 }
   0x4   :  { %20 = dma.hbm_to_vmem [thread:$0]  %s16_s11, 128, %s18_s13, [#allocation3]  }
   0x5   :  { %s175_s17 = smov [#allocation5]  }
   0x6   :  { %s28_s18 = sshll.u32 %s175_s17, 4  ;;  %s29_s18 = int_to_ptr.vmem [resolvable:$true] %s28_s18 }
   0x7   :  { %31 = dma.hbm_to_vmem [thread:$0]  %s27_s16, 128, %s29_s18, [#allocation6]  }
   0x8   :  { %168 = dma.done.wait [#allocation3], 128  }
   0x9   :  { %169 = vsyncadd [#allocation3], 4294967168 }
   0xa   :  { %170 = dma.done.wait [#allocation6], 128  }
   0xb   :  { %171 = vsyncadd [#allocation6], 4294967168  ;;  %v40_v0 = vld [vmem:[#allocation2] sm:$0xff]  ;;  %v42_v1 = vld [vmem:[#allocation5] sm:$0xff]  ;;  %v176_v4 = vmov 0.0   ;;  %s177_s0 = smov [#allocation7]  }
   0xc   :  { %v41_v2 = vmax.f32 %v40_v0, 1e-06  ;;  %v43_v3 = vmax.f32 %v42_v1, 1e-06  ;;  %s69_s1 = sshll.u32 %s177_s0, 4  ;;  %s71_s21 = sshll.u32 %s206_s2, 4  ;;  %s70_s1 = int_to_ptr.vmem [resolvable:$true] %s69_s1  ;;  %s72_s21 = int_to_ptr.hbm [resolvable:$true] %s71_s21 }
   0xd   :  { %s178_s22 = smov 128   ;;  %s179_s23 = smov 8  }
   0xe   :  { %vm44_vm0 = vcmp.lt.f32.partialorder %v43_v3, inf  ;;  %92 = vlog2.f32 %v41_v2 }
   0xf   :  { %94 = vlog2.f32 %v43_v3  ;;  %v85_v5 = vsel %vm44_vm0, 1.0, %v176_v4 }
  0x10   :  { %64 = vst [vmem:[#allocation7 + $0x10] sm:$0xff] %v85_v5 }
  0x14   :  { %v93_v6 = vpop.eup %92 }
  0x15   :  { %v95_v7 = vpop.eup %94  ;;  %v46_v8 = vmul.f32 0.6931472, %v93_v6 }
  0x16   :  { %v48_v9 = vmul.f32 0.6931472, %v95_v7 }
  0x18   :  { %v49_v10 = vsub.f32 %v46_v8, %v48_v9 }
  0x1a   :  { %v50_v11 = vsel %vm44_vm0, %v49_v10, 0.0 }
  0x1b   :  { %60 = vst [vmem:[#allocation7] sm:$0xff] %v50_v11  ;;  %v55_v12 = vmul.f32 %v50_v11, %v50_v11 }
  0x1d   :  { %62 = vst [vmem:[#allocation7 + $0x8] sm:$0xff] %v55_v12 }
  0x1e   :  { %77 = dma.vmem_to_hbm [thread:$0]  %s70_s1, 384, %s72_s21, [#allocation4], %s178_s22, %s178_s22, %s179_s23  }
  0x1f   :  { %172 = dma.done.wait [#allocation4], 384  }
  0x20   :  { %173 = vsyncadd [#allocation4], 4294966912 }
  0x21   :  { %82 = vsyncpa [#allocation3], 1 }
  0x22   :  { %83 = vsyncpa [#allocation6], 1 }
  0x23   :  { %84 = vsyncpa [#allocation4], 1 }

</bundles_post_ra>
